<compile_context>
chip_gen: v7x
topology: tpu7x:2x2x1
jax: 0.10.0
libtpu: 0.0.40
codegen_flags: <defaults>
</compile_context>

<pallas_src>
import functools

import jax
import jax.numpy as jnp
from jax.experimental import pallas as pl
from jax.experimental.pallas import tpu as pltpu


def _round_up(x, m):
    return (x + m - 1) // m * m


def _bypass_mlp_kernel(num_linear, bypass_count, in_main, *refs):
    """One batch tile of the whole MLP (all weights VMEM-resident).

    refs layout:
      refs[0]            : x tile      [TB, input_size]   (bf16 storage, f32 compute)
      hidden layer i     : w_i, b_i    ([in_i, out_i], [1, out_i])
      last layer         : w_main, w_byp, b   (weight split at the concat boundary)
      refs[-1]           : output tile [TB, output_size]  (f32)
    """
    x_ref = refs[0]
    o_ref = refs[-1]
    param_refs = refs[1:-1]

    # Upcast once on load; all math (MXU accum + ReLU/sigmoid epilogue) stays f32,
    # which is also the right choice for v5e (no bf16 VPU/EUP).
    x = x_ref[...].astype(jnp.float32)
    h = x[:, :in_main]          # x[:, :-bypass]
    saved = x[:, in_main:]      # x[:, -bypass:]

    idx = 0
    for layer in range(num_linear):
        is_last = layer == num_linear - 1
        if not is_last:
            w = param_refs[idx][...]
            b = param_refs[idx + 1][...]
            idx += 2
            h = jnp.maximum(
                jnp.dot(h, w, preferred_element_type=jnp.float32) + b, 0.0
            )  # ReLU
        else:
            w_main = param_refs[idx][...]
            w_byp = param_refs[idx + 1][...]
            b = param_refs[idx + 2][...]
            # Split matmul at the concat boundary; the K=bypass dot is free MXU filler.
            logits = (
                jnp.dot(h, w_main, preferred_element_type=jnp.float32)
                + jnp.dot(saved, w_byp, preferred_element_type=jnp.float32)
                + b
            )
            # Exact sigmoid: exp (EUP) + exact reciprocal (EUP).
            o_ref[...] = pl.reciprocal(1.0 + jnp.exp(-logits), approx=False)


def get_layer_sizes(input_size, output_size, hidden_sizes, bypass_count):
    # Mirrors BypassedInputsModel._get_layer_sizes
    layer_sizes = [input_size] + list(hidden_sizes) + [output_size]
    layer_sizes[0] = layer_sizes[0] - bypass_count
    layer_sizes[-2] = layer_sizes[-2] + bypass_count
    return layer_sizes


def init_params(key, input_size, output_size, hidden_sizes, bypass_count):
    """Deterministic nn.Linear-style init (uniform(-1/sqrt(fan_in), 1/sqrt(fan_in)))."""
    layer_sizes = get_layer_sizes(input_size, output_size, hidden_sizes, bypass_count)
    n_linear = len(layer_sizes) - 1
    params = []
    for i in range(n_linear):
        is_last = i == n_linear - 1
        fan_in = layer_sizes[i] + (bypass_count if is_last else 0)
        fan_out = layer_sizes[i + 1]
        key, kw, kb = jax.random.split(key, 3)
        bound = 1.0 / float(fan_in) ** 0.5
        w = jax.random.uniform(kw, (fan_in, fan_out), jnp.float32, -bound, bound)
        b = jax.random.uniform(kb, (1, fan_out), jnp.float32, -bound, bound)
        params.append((w, b))
    return params


def reference_forward(x, params, bypass_count):
    """Pure-JAX reference mirroring the PyTorch forward()."""
    saved = x[:, -bypass_count:]
    h = x[:, :-bypass_count]
    num_linear = len(params)
    for i, (w, b) in enumerate(params):
        if i == num_linear - 1:
            h = jnp.concatenate([h, saved], axis=1)
            h = jax.nn.sigmoid(h @ w + b)
        else:
            h = jax.nn.relu(h @ w + b)
    return h


def bypassed_forward(
    x,
    params,
    bypass_count,
    *,
    block_batch=4096,
    input_dtype=jnp.bfloat16,
    min_pallas_batch=1024,
):
    num_linear = len(params)
    batch, in_size = x.shape
    out_size = params[-1][0].shape[1]
    in_main = in_size - bypass_count

    # Tiny batches: custom-call launch overhead dwarfs the math; let XLA fuse it.
    if batch < min_pallas_batch:
        return reference_forward(x, params, bypass_count)

    # ---- Flatten parameters (split last weight at the concat boundary) -------------
    flat_params = []
    for i, (w, b) in enumerate(params):
        if i == num_linear - 1:
            split = w.shape[0] - bypass_count
            flat_params += [w[:split], w[split:], b]
        else:
            flat_params += [w, b]
    flat_params = [jnp.asarray(p, jnp.float32) for p in flat_params]

    # bf16 input storage (halves the dominant HBM stream); f32 compute in-kernel.
    x_in = x.astype(input_dtype)
    in_itemsize = jnp.dtype(input_dtype).itemsize

    # ---- Batch tiling (no padding; Pallas masks the partial last block) ------------
    tb = min(block_batch, _round_up(batch, 8))           # f32 sublane tile = 8
    if _round_up(batch, 8) >= 16:
        # Keep at least 2 grid steps when the batch allows (v7x has 2 TensorCores).
        tb = min(tb, _round_up(pl.cdiv(batch, 2), 8))
    tb = max(8, _round_up(tb, 8))
    grid = (pl.cdiv(batch, tb),)

    x_spec = pl.BlockSpec((tb, in_size), lambda i: (i, 0))
    # Parameters: whole array, same block every iteration -> VMEM-resident.
    param_specs = [pl.BlockSpec(p.shape, lambda i: (0, 0)) for p in flat_params]
    out_spec = pl.BlockSpec((tb, out_size), lambda i: (i, 0))

    # ---- Cost estimate & VMEM budget -------------------------------------------------
    flops = 2 * batch * sum(w.shape[0] * w.shape[1] for w, _ in params)
    transcendentals = 2 * batch * out_size                 # exp + reciprocal
    param_bytes = sum(p.size * p.dtype.itemsize for p in flat_params)
    bytes_accessed = batch * in_size * in_itemsize + batch * out_size * 4 + param_bytes
    cost = pl.CostEstimate(
        flops=flops, transcendentals=transcendentals, bytes_accessed=bytes_accessed
    )

    hidden_max = max(max(w.shape[1] for w, _ in params), in_size)
    act_bytes = 2 * tb * in_size * in_itemsize + 2 * tb * out_size * 4  # double-buffered
    scratch_bytes = 4 * tb * hidden_max * 4                             # intermediates (f32)
    vmem_limit = int(
        min(32 * 1024 * 1024,
            max(4 * 1024 * 1024, 2 * (param_bytes + act_bytes + scratch_bytes)))
    )

    kernel = functools.partial(_bypass_mlp_kernel, num_linear, bypass_count, in_main)

    out = pl.pallas_call(
        kernel,
        out_shape=jax.ShapeDtypeStruct((batch, out_size), jnp.float32),
        grid_spec=pltpu.PrefetchScalarGridSpec(
            num_scalar_prefetch=0,
            grid=grid,
            in_specs=[x_spec] + param_specs,
            out_specs=out_spec,
        ),
        compiler_params=pltpu.CompilerParams(
            dimension_semantics=("parallel",),
            vmem_limit_bytes=vmem_limit,
        ),
        cost_estimate=cost,
    )(x_in, *flat_params)

    return out


if __name__ == "__main__":
    # Small shapes consistent with the module.
    input_size = 32
    output_size = 8
    hidden_sizes = [32, 28]
    bypass_count = 4

    key = jax.random.PRNGKey(0)
    key, kx, kx2, kp = jax.random.split(key, 4)
    params = init_params(kp, input_size, output_size, hidden_sizes, bypass_count)

    # --- small-batch demo (force the Pallas path) ------------------------------------
    batch = 8
    x = jax.random.normal(kx, (batch, input_size), dtype=jnp.float32)
    out = jax.block_until_ready(
        bypassed_forward(x, params, bypass_count, min_pallas_batch=0)
    )
    ref = reference_forward(x, params, bypass_count)
    assert out.shape == (batch, output_size)
    # Only deltas vs the f32 reference: bf16 rounding of x and matmul op ordering.
    assert jnp.allclose(out, ref, atol=1e-2, rtol=1e-2), "mismatch vs JAX reference"

    # --- larger, non-tile-divisible batch: exercises the tiled grid, the >=2-step
    # megacore split, and the unpadded partial-last-block path ------------------------
    batch2 = 2057
    x2 = jax.random.normal(kx2, (batch2, input_size), dtype=jnp.float32)
    out2 = jax.block_until_ready(bypassed_forward(x2, params, bypass_count))
    ref2 = reference_forward(x2, params, bypass_count)
    assert out2.shape == (batch2, output_size)
    assert jnp.allclose(out2, ref2, atol=1e-2, rtol=1e-2), "mismatch (tiled path)"

    print("KERNEL_OK")
</pallas_src>

<mosaic_0001>
module attributes {stable_mosaic.version = 11 : i64} {
  func.func @_bypass_mlp_kernel(%arg0: i32, %arg1: memref<8x32xbf16, #tpu.memory_space<vmem>>, %arg2: memref<28x32xf32, #tpu.memory_space<vmem>>, %arg3: memref<1x32xf32, #tpu.memory_space<vmem>>, %arg4: memref<32x32xf32, #tpu.memory_space<vmem>>, %arg5: memref<1x32xf32, #tpu.memory_space<vmem>>, %arg6: memref<32x8xf32, #tpu.memory_space<vmem>>, %arg7: memref<4x8xf32, #tpu.memory_space<vmem>>, %arg8: memref<1x8xf32, #tpu.memory_space<vmem>>, %arg9: memref<8x8xf32, #tpu.memory_space<vmem>>) attributes {dimension_semantics = [#tpu.dimension_semantics<parallel>], iteration_bounds = array<i64: 1>, scalar_prefetch = 0 : i64, scratch_operands = 0 : i64, tpu.core_type = #tpu.core_type<tc>, window_params = [{transform_indices = @transform_0, window_bounds = array<i64: 8, 32>}, {pipeline_mode = #tpu.pipeline_mode<synchronous>, transform_indices = @transform_1, window_bounds = array<i64: 28, 32>}, {pipeline_mode = #tpu.pipeline_mode<synchronous>, transform_indices = @transform_2, window_bounds = array<i64: 1, 32>}, {pipeline_mode = #tpu.pipeline_mode<synchronous>, transform_indices = @transform_3, window_bounds = array<i64: 32, 32>}, {pipeline_mode = #tpu.pipeline_mode<synchronous>, transform_indices = @transform_4, window_bounds = array<i64: 1, 32>}, {pipeline_mode = #tpu.pipeline_mode<synchronous>, transform_indices = @transform_5, window_bounds = array<i64: 32, 8>}, {pipeline_mode = #tpu.pipeline_mode<synchronous>, transform_indices = @transform_6, window_bounds = array<i64: 4, 8>}, {pipeline_mode = #tpu.pipeline_mode<synchronous>, transform_indices = @transform_7, window_bounds = array<i64: 1, 8>}, {transform_indices = @transform_8, window_bounds = array<i64: 8, 8>}]} {
    %c0 = arith.constant 0 : index
    %c0_0 = arith.constant 0 : index
    %0 = vector.load %arg1[%c0, %c0_0] : memref<8x32xbf16, #tpu.memory_space<vmem>>, vector<8x32xbf16>
    %1 = arith.extf %0 : vector<8x32xbf16> to vector<8x32xf32>
    %2 = vector.extract_strided_slice %1 {offsets = [0, 0], sizes = [8, 28], strides = [1, 1]} : vector<8x32xf32> to vector<8x28xf32>
    %3 = vector.extract_strided_slice %1 {offsets = [0, 28], sizes = [8, 4], strides = [1, 1]} : vector<8x32xf32> to vector<8x4xf32>
    %c0_1 = arith.constant 0 : index
    %c0_2 = arith.constant 0 : index
    %4 = vector.load %arg2[%c0_1, %c0_2] : memref<28x32xf32, #tpu.memory_space<vmem>>, vector<28x32xf32>
    %c0_3 = arith.constant 0 : index
    %c0_4 = arith.constant 0 : index
    %5 = vector.load %arg3[%c0_3, %c0_4] : memref<1x32xf32, #tpu.memory_space<vmem>>, vector<1x32xf32>
    %cst = arith.constant dense<0.000000e+00> : vector<8x32xf32>
    %6 = tpu.matmul %2, %4, %cst {dimension_numbers = #tpu.dot_dimension_numbers<[1], [0], [0], [1], [0, 0, 1, 1], [], []>} : vector<8x28xf32>, vector<28x32xf32>, vector<8x32xf32> -> vector<8x32xf32>
    %7 = vector.broadcast %5 : vector<1x32xf32> to vector<8x32xf32>
    %8 = arith.addf %6, %7 : vector<8x32xf32>
    %cst_5 = arith.constant 0.000000e+00 : f32
    %9 = vector.broadcast %cst_5 : f32 to vector<8x32xf32>
    %10 = arith.maximumf %8, %9 : vector<8x32xf32>
    %c0_6 = arith.constant 0 : index
    %c0_7 = arith.constant 0 : index
    %11 = vector.load %arg4[%c0_6, %c0_7] : memref<32x32xf32, #tpu.memory_space<vmem>>, vector<32x32xf32>
    %c0_8 = arith.constant 0 : index
    %c0_9 = arith.constant 0 : index
    %12 = vector.load %arg5[%c0_8, %c0_9] : memref<1x32xf32, #tpu.memory_space<vmem>>, vector<1x32xf32>
    %cst_10 = arith.constant dense<0.000000e+00> : vector<8x32xf32>
    %13 = tpu.matmul %10, %11, %cst_10 {dimension_numbers = #tpu.dot_dimension_numbers<[1], [0], [0], [1], [0, 0, 1, 1], [], []>} : vector<8x32xf32>, vector<32x32xf32>, vector<8x32xf32> -> vector<8x32xf32>
    %14 = vector.broadcast %12 : vector<1x32xf32> to vector<8x32xf32>
    %15 = arith.addf %13, %14 : vector<8x32xf32>
    %cst_11 = arith.constant 0.000000e+00 : f32
    %16 = vector.broadcast %cst_11 : f32 to vector<8x32xf32>
    %17 = arith.maximumf %15, %16 : vector<8x32xf32>
    %c0_12 = arith.constant 0 : index
    %c0_13 = arith.constant 0 : index
    %18 = vector.load %arg6[%c0_12, %c0_13] : memref<32x8xf32, #tpu.memory_space<vmem>>, vector<32x8xf32>
    %c0_14 = arith.constant 0 : index
    %c0_15 = arith.constant 0 : index
    %19 = vector.load %arg7[%c0_14, %c0_15] : memref<4x8xf32, #tpu.memory_space<vmem>>, vector<4x8xf32>
    %c0_16 = arith.constant 0 : index
    %c0_17 = arith.constant 0 : index
    %20 = vector.load %arg8[%c0_16, %c0_17] : memref<1x8xf32, #tpu.memory_space<vmem>>, vector<1x8xf32>
    %cst_18 = arith.constant dense<0.000000e+00> : vector<8x8xf32>
    %21 = tpu.matmul %17, %18, %cst_18 {dimension_numbers = #tpu.dot_dimension_numbers<[1], [0], [0], [1], [0, 0, 1, 1], [], []>} : vector<8x32xf32>, vector<32x8xf32>, vector<8x8xf32> -> vector<8x8xf32>
    %cst_19 = arith.constant dense<0.000000e+00> : vector<8x8xf32>
    %22 = tpu.matmul %3, %19, %cst_19 {dimension_numbers = #tpu.dot_dimension_numbers<[1], [0], [0], [1], [0, 0, 1, 1], [], []>} : vector<8x4xf32>, vector<4x8xf32>, vector<8x8xf32> -> vector<8x8xf32>
    %23 = arith.addf %21, %22 : vector<8x8xf32>
    %24 = vector.broadcast %20 : vector<1x8xf32> to vector<8x8xf32>
    %25 = arith.addf %23, %24 : vector<8x8xf32>
    %cst_20 = arith.constant 0.000000e+00 : f32
    %26 = vector.broadcast %cst_20 : f32 to vector<8x8xf32>
    %27 = arith.subf %26, %25 : vector<8x8xf32>
    %28 = math.exp %27 : vector<8x8xf32>
    %cst_21 = arith.constant 1.000000e+00 : f32
    %29 = vector.broadcast %cst_21 : f32 to vector<8x8xf32>
    %30 = arith.addf %29, %28 : vector<8x8xf32>
    %31 = tpu.reciprocal %30 : vector<8x8xf32> -> vector<8x8xf32>
    %c0_22 = arith.constant 0 : index
    %c0_23 = arith.constant 0 : index
    %32 = vector.load %arg9[%c0_22, %c0_23] : memref<8x8xf32, #tpu.memory_space<vmem>>, vector<8x8xf32>
    tpu.vector_store %arg9[%c0_22, %c0_23], %31 {strides = array<i32>} : memref<8x8xf32, #tpu.memory_space<vmem>>, vector<8x8xf32>,
    return
  }
  func.func @transform_0(%arg0: i32) -> (i32, i32) {
    %c0_i32 = arith.constant 0 : i32
    %c0_i32_0 = arith.constant 0 : i32
    return %arg0, %c0_i32 : i32, i32
  }
  func.func @transform_1(%arg0: i32) -> (i32, i32) {
    %c0_i32 = arith.constant 0 : i32
    %c0_i32_0 = arith.constant 0 : i32
    %c0_i32_1 = arith.constant 0 : i32
    return %c0_i32, %c0_i32_0 : i32, i32
  }
  func.func @transform_2(%arg0: i32) -> (i32, i32) {
    %c0_i32 = arith.constant 0 : i32
    %c0_i32_0 = arith.constant 0 : i32
    %c0_i32_1 = arith.constant 0 : i32
    return %c0_i32, %c0_i32_0 : i32, i32
  }
  func.func @transform_3(%arg0: i32) -> (i32, i32) {
    %c0_i32 = arith.constant 0 : i32
    %c0_i32_0 = arith.constant 0 : i32
    %c0_i32_1 = arith.constant 0 : i32
    return %c0_i32, %c0_i32_0 : i32, i32
  }
  func.func @transform_4(%arg0: i32) -> (i32, i32) {
    %c0_i32 = arith.constant 0 : i32
    %c0_i32_0 = arith.constant 0 : i32
    %c0_i32_1 = arith.constant 0 : i32
    return %c0_i32, %c0_i32_0 : i32, i32
  }
  func.func @transform_5(%arg0: i32) -> (i32, i32) {
    %c0_i32 = arith.constant 0 : i32
    %c0_i32_0 = arith.constant 0 : i32
    %c0_i32_1 = arith.constant 0 : i32
    return %c0_i32, %c0_i32_0 : i32, i32
  }
  func.func @transform_6(%arg0: i32) -> (i32, i32) {
    %c0_i32 = arith.constant 0 : i32
    %c0_i32_0 = arith.constant 0 : i32
    %c0_i32_1 = arith.constant 0 : i32
    return %c0_i32, %c0_i32_0 : i32, i32
  }
  func.func @transform_7(%arg0: i32) -> (i32, i32) {
    %c0_i32 = arith.constant 0 : i32
    %c0_i32_0 = arith.constant 0 : i32
    %c0_i32_1 = arith.constant 0 : i32
    return %c0_i32, %c0_i32_0 : i32, i32
  }
  func.func @transform_8(%arg0: i32) -> (i32, i32) {
    %c0_i32 = arith.constant 0 : i32
    %c0_i32_0 = arith.constant 0 : i32
    return %arg0, %c0_i32 : i32, i32
  }
}

</mosaic_0001>

<bundles_post_ra>
// kernel: tpu_custom_call.1
= control target key start
LH: loop header
LB: loop body
LE: loop exit
PB: predicated region body
PF: predicated region fallthrough
CT: control target
= control target key end

     0   :  { %13 = vsyncpa [#allocation3], 0  ;;  %s677_s0 = inlined_call_operand.vmem [shape: bf16[8,32], index: 0, kind: input, shape index: {}]   ;;  %s678_s1 = inlined_call_operand.vmem [shape: f32[28,32], index: 1, kind: input, shape index: {}]   ;;  %s679_s2 = inlined_call_operand.vmem [shape: f32[1,32], index: 2, kind: input, shape index: {}]   ;;  %s680_s3 = inlined_call_operand.hbm [shape: f32[32,32], index: 3, kind: input, shape index: {}]   ;;  %s681_s4 = inlined_call_operand.vmem [shape: f32[1,32], index: 4, kind: input, shape index: {}]   ;;  %s682_s5 = inlined_call_operand.vmem [shape: f32[32,8], index: 5, kind: input, shape index: {}]   ;;  %s683_s6 = inlined_call_operand.vmem [shape: f32[4,8], index: 6, kind: input, shape index: {}]   ;;  %s684_s7 = inlined_call_operand.vmem [shape: f32[1,8], index: 7, kind: input, shape index: {}]   ;;  %s685_s8 = inlined_call_operand.hbm [shape: f32[8,8], index: 8, kind: output, shape index: {}]  }
   0x1   :  { %14 = vsyncpa [#allocation4], 0  ;;  %s552_s27 = smov [#allocation2]   ;;  %s504_s9 = scalar_lea.hbm %s680_s3, 512 }
   0x2   :  { %s26_s28 = sshll.u32 %s552_s27, 4  ;;  %p505_p0 = scmp.ne.s32.totalorder %s680_s3, %s504_s9  ;;  %s27_s28 = int_to_ptr.vmem [resolvable:$true] %s26_s28 }
   0x3   :  { %p508_p1 = scmp.lt.u32.totalorder %s504_s9, %s680_s3 }
   0x5   :  { %p510_p2 = pnand %p508_p1, %p505_p0 }
   0x7   :  { %513 = shalt.err (!%p510_p2)
}
   0x8   :  { %s514_s14 = scalar_lea.vmem %s27_s28, 512  ;;  %p519_p4 = scmp.lt.s32.totalorder %s27_s28, %s27_s28 }
   0x9   :  { %p515_p3 = scmp.ne.s32.totalorder %s27_s28, %s514_s14  ;;  %p520_p5 = scmp.lt.s32.totalorder %s514_s14, %s514_s14 }
   0xb   :  { %p521_p6 = por %p520_p5, %p519_p4 }
   0xd   :  { %p522_p7 = pnand %p521_p6, %p515_p3 }
   0xf   :  { %525 = shalt.err (!%p522_p7)
}
  0x10   :  { %s553_s15 = smov 128   ;;  %s554_s16 = smov 8  }
  0x11   :  { %32 = dma.hbm_to_vmem [thread:$0]  %s680_s3, 512, %s27_s28, [#allocation3], %s553_s15, %s553_s15, %s554_s16  }
  0x12   :  { %548 = dma.done.wait [#allocation3], 512  }
  0x13   :  { %549 = vsyncadd [#allocation3], 4294966784  ;;  %v555_v0 = vmov 0.0|0.0   ;;  %vm556_vm0 = vmmov 0   ;;  %v557_v1 = vmov 0.0   ;;  %v46_v2 = vld [vmem:[%s678_s1] sm:$0xff] }
  0x14   :  { %472 = vmatprep.subr.bf16.mxu0 %v555_v0  ;;  %479 = vmatprep.subr.bf16.mxu1 %v555_v0  ;;  %v47_v3 = vld [vmem:[%s678_s1 + $0x8] sm:$0xff]  ;;  %v48_v4 = vld [vmem:[%s678_s1 + $0x10] sm:$0xff]  ;;  %v49_v6 = vld [vmem:[%s678_s1 + $0x18] sm:$0xf]  ;;  %vm61_vm1 = vcmask 1043456   ;;  %vm558_vm2 = vmmov 1  }
  0x15   :  { %442 = vmatprep.mubr.msk.f32.mxu0 %vm556_vm0, %v557_v1  ;;  %453 = vmatprep.mubr.msk.f32.mxu1 %vm556_vm0, %v557_v1  ;;  %v473_v5 = vpack.c.bf16 %v47_v3, %v46_v2  ;;  %v136_v7 = vld [vmem:[#allocation2] sm:$0xff]  ;;  %v137_v8 = vld [vmem:[#allocation2 + $0x8] sm:$0xff]  ;;  %v476_v9 = vpack.c.bf16 %v49_v6, %v48_v4  ;;  %vm477_vm3 = vmpackc.low %vm61_vm1, %vm558_vm2  ;;  %vm57_vm4 = vcmask 228352   ;;  %vm147_vm5 = vcmask 261120  }
  0x16   :  { %v44_v10 = vld [vmem:[%s677_s0] sm:$0xf]  ;;  %v480_v11 = vpack.c.bf16 %v137_v8, %v136_v7  ;;  %v138_v13 = vld [vmem:[#allocation2 + $0x10] sm:$0xff]  ;;  %v139_v14 = vld [vmem:[#allocation2 + $0x18] sm:$0xff]  ;;  %s559_s0 = smov 100   ;;  %vm230_vm6 = vcmask 31744  }
  0x17   :  { %474 = vmatpush3.bf16.msra.mxu0 %v473_v5  ;;  %v45_v12 = vunpack.c.l.bf16 %v44_v10  ;;  %v483_v15 = vpack.c.bf16 %v139_v14, %v138_v13  ;;  %v408_v16 = vld [vmem:[%s679_s2] ss:$0 sm:$0xff]  ;;  %v223_v18 = vld [vmem:[%s682_s5 + $0x8] sm:$0xff]  ;;  %v224_v24 = vld [vmem:[%s682_s5 + $0x10] sm:$0xff]  ;;  %vm391_vm7 = vcmask 64512  }
  0x18   :  { %475 = vmatprep.subr.bf16.mxu0 %v555_v0  ;;  %481 = vmatpush3.bf16.msra.mxu1 %v480_v11  ;;  %v222_v17 = vld [vmem:[%s682_s5] sm:$0xff]  ;;  %v225_v25 = vld [vmem:[%s682_s5 + $0x18] sm:$0xff] }
  0x19   :  { %482 = vmatprep.subr.bf16.mxu1 %v555_v0  ;;  %228 = vrot.lane.b32.xlu0 %v45_v12, %s559_s0  ;;  %v486_v22 = vpack.c.bf16 %v223_v18, %v222_v17  ;;  %v489_v26 = vpack.c.bf16 %v225_v25, %v224_v24  ;;  %v226_v27 = vld [vmem:[%s683_s6] sm:$0xf] }
  0x1a   :  { %v411_v29 = vld [vmem:[%s681_s4] ss:$0 sm:$0xff]  ;;  %s560_s4 = smov [#allocation5]  }
  0x1b   :  { %478 = vmatpush3.bf16.msk.msra.mxu0 %vm477_vm3, %v476_v9  ;;  %v416_v36 = vld [vmem:[%s684_s7] ss:$0 sm:$0xff]  ;;  %s399_s18 = sshll.u32 %s560_s4, 4  ;;  %s400_s18 = int_to_ptr.vmem [resolvable:$true] %s399_s18 }
  0x1c   :  { %456 = vmatprep.subr.mxu0 %v557_v1  ;;  %484 = vmatpush3.bf16.msra.mxu1 %v483_v15  ;;  %s526_s19 = scalar_lea.vmem %s400_s18, 128  ;;  %p531_p9 = scmp.lt.s32.totalorder %s400_s18, %s400_s18 }
  0x1d   :  { %485 = vmatprep.subr.bf16.mxu1 %v555_v0  ;;  %p527_p8 = scmp.ne.s32.totalorder %s400_s18, %s526_s19  ;;  %p532_p10 = scmp.lt.s32.totalorder %s526_s19, %s526_s19 }
  0x1e   :  { %443 = vmatmul.mubr.msk.f32.vlgmr.msra.gmra.mrb[0].mxu0 %vm57_vm4, %v45_v12 }
  0x1f   :  { %458 = vmatprep.mubr.msk.f32.mxu0 %vm556_vm0, %v557_v1  ;;  %457 = vmatpush3.msk.msra.mxu0 %vm61_vm1, %v226_v27  ;;  %p533_p11 = por %p532_p10, %p531_p9 }
  0x21   :  { %p534_p12 = pnand %p533_p11, %p527_p8 }
  0x8b   :  { %v229_v28 = vpop.permute.xlu0 %228 }
  0x8c   :  { %459 = vmatmul.mubr.msk.f32.vlgmr.msra.gmra.mrb[2].mxu0 %vm230_vm6, %v229_v28 }
  0xf1   :  { %v131_v19 = vpop.f32.mrb[0].mxu0 }
  0xf2   :  { %v132_v20 = vadd.f32 %v408_v16, %v131_v19  ;;  %v444_v21 = vpop.f32.mrb[1].mxu0 }
  0xf4   :  { %v135_v23 = vmax.f32 %v132_v20, 0.0 }
  0xf6   :  { %454 = vmatmul.mubr.msk.f32.vlgmr.msra.gmra.mrb[0].mxu1 %vm147_vm5, %v135_v23 }
  0xf7   :  { %487 = vmatpush3.bf16.msra.mxu1 %v486_v22  ;;  %469 = vmatprep.mubr.msk.f32.mxu1 %vm556_vm0, %v557_v1 }
  0xf8   :  { %488 = vmatprep.subr.bf16.mxu1 %v555_v0 }
  0xfb   :  { %490 = vmatpush3.bf16.msra.mxu1 %v489_v26 }
 0x15f   :  { %v302_v34 = vpop.f32.mrb[2].mxu0 }
 0x160   :  { %v460_v35 = vpop.f32.mrb[3].mxu0 }
 0x1c9   :  { %v217_v30 = vpop.f32.mrb[0].mxu1 }
 0x1ca   :  { %v218_v31 = vadd.f32 %v411_v29, %v217_v30  ;;  %v455_v32 = vpop.f32.mrb[1].mxu1 }
 0x1cc   :  { %v221_v33 = vmax.f32 %v218_v31, 0.0 }
 0x1ce   :  { %470 = vmatmul.mubr.msk.f32.vlgmr.msra.gmra.mrb[2].mxu1 %vm147_vm5, %v221_v33 }
 0x2a1   :  { %v375_v37 = vpop.f32.mrb[2].mxu1 }
 0x2a2   :  { %v376_v38 = vadd.f32 %v375_v37, %v302_v34  ;;  %v471_v39 = vpop.f32.mrb[3].mxu1 }
 0x2a4   :  { %v385_v40 = vadd.f32 %v416_v36, %v376_v38 }
 0x2a6   :  { %v386_v41 = vsub.f32 0.0, %v385_v40 }
 0x2a8   :  { %v387_v42 = vmul.f32 1.442695, %v386_v41 }
 0x2aa   :  { %500 = vpow2.f32 %v387_v42 }
 0x2b4   :  { %v501_v43 = vpop.eup %500 }
 0x2b5   :  { %v389_v44 = vadd.f32 1.0, %v501_v43 }
 0x2b7   :  { %502 = vrcp.f32 %v389_v44 }
 0x2c1   :  { %v503_v45 = vpop.eup %502 }
 0x2c2   :  { %392 = vst.msk [vmem:[#allocation5] sm:$0xff] %vm391_vm7, %v503_v45 }
 0x2c3   :  { %537 = shalt.err (!%p534_p12)
}
 0x2c4   :  { %s538_s21 = scalar_lea.hbm %s685_s8, 128 }
 0x2c5   :  { %p539_p13 = scmp.ne.s32.totalorder %s685_s8, %s538_s21  ;;  %p542_p0 = scmp.lt.u32.totalorder %s538_s21, %s685_s8 }
 0x2c7   :  { %p544_p1 = pnand %p542_p0, %p539_p13 }
 0x2c9   :  { %547 = shalt.err (!%p544_p1)
}
 0x2ca   :  { %402 = dma.vmem_to_hbm [thread:$0]  %s400_s18, 128, %s685_s8, [#allocation4]  }
 0x2cb   :  { %550 = dma.done.wait [#allocation4], 128  }
 0x2cc   :  { %551 = vsyncadd [#allocation4], 4294967168 }
 0x2cd   :  { %406 = vsyncpa [#allocation3], 1 }
 0x2ce   :  { %407 = vsyncpa [#allocation4], 1 }

</bundles_post_ra>
